<compile_context>
chip_gen: v5e
topology: v5e:2x2
jax: 0.10.0
libtpu: 0.0.40
codegen_flags: <defaults>
</compile_context>

<pallas_src>
import jax
import jax.numpy as jnp
from jax.experimental import pallas as pl
from jax.experimental.pallas import tpu as pltpu

LANE = 128


def _round_up(n, m):
    return ((n + m - 1) // m) * m


# --------------------------------------------------------------------------- #
# Kernel
# --------------------------------------------------------------------------- #
def residual_block_kernel(
    Fx_ref, x_ref,
    wp_ref, bp_ref,      # fused projections: blockdiag(wf, wx)
    w1_ref, b1_ref,      # fused first layers of map_t / map_s  (N = 2*hidden, padded)
    w2_ref, b2_ref,      # fused second layers: blockdiag(wt2, ws2)
    w3_ref, b3_ref,      # fused third layers: t -> lanes [0,Dp), s -> lanes [Dp,2Dp)
    o_ref,
):
    Dp = o_ref.shape[-1]

    Fx = Fx_ref[...]                                               # bf16 [F | x | 0]

    # [Fp | xp] = [F | x] @ blockdiag(wf, wx) + [bf | bx]
    proj = jnp.dot(Fx, wp_ref[...], preferred_element_type=jnp.float32) + bp_ref[...]
    proj = proj.astype(jnp.bfloat16)

    # fused first layers: h = [h_t | h_s]
    h = jnp.dot(proj, w1_ref[...], preferred_element_type=jnp.float32) + b1_ref[...]
    h = jnp.maximum(h, 0.0).astype(jnp.bfloat16)

    # fused second layers (block-diagonal keeps the t/s halves independent)
    h = jnp.dot(h, w2_ref[...], preferred_element_type=jnp.float32) + b2_ref[...]
    h = jnp.maximum(h, 0.0).astype(jnp.bfloat16)

    # fused third layers -> lane-dense [t | s] slab, halves 128-aligned
    ts = jnp.dot(h, w3_ref[...], preferred_element_type=jnp.float32) + b3_ref[...]
    t = ts[:, :Dp]
    s = jnp.clip(ts[:, Dp:], -2.0, 2.0)        # nn.Hardtanh(min_val=-2, max_val=2)

    # use_difference=True ; include_scaling=True   (f32 epilogue)
    x = x_ref[...]
    o_ref[...] = ((x - t) * jnp.exp(-s)).astype(o_ref.dtype)


# --------------------------------------------------------------------------- #
# Host-side weight packing (one-time): fuse + pad to 128-lane-aligned matrices
# --------------------------------------------------------------------------- #
def pack_params(p, *, feat_dim, input_dim, feat_proj_dim, input_proj_dim, hidden):
    Kp = _round_up(feat_dim + input_dim, LANE)            # contraction of the proj matmul
    Pp = _round_up(feat_proj_dim + input_proj_dim, LANE)  # width of [Fp | xp]
    Hp = _round_up(2 * hidden, LANE)                      # width of fused hidden slab
    Dp = _round_up(input_dim, LANE)                       # lane-dense output half-width

    # projections: blockdiag(wf, wx)
    wp = jnp.zeros((Kp, Pp), jnp.float32)
    wp = wp.at[:feat_dim, :feat_proj_dim].set(p["wf"])
    wp = wp.at[feat_dim:feat_dim + input_dim,
               feat_proj_dim:feat_proj_dim + input_proj_dim].set(p["wx"])
    bp = jnp.zeros((1, Pp), jnp.float32)
    bp = bp.at[:, :feat_proj_dim].set(p["bf"])
    bp = bp.at[:, feat_proj_dim:feat_proj_dim + input_proj_dim].set(p["bx"])

    # first layers of map_t / map_s, concatenated along the output (N) axis
    w1t = jnp.concatenate([p["wt1f"], p["wt1x"]], axis=0)      # (fpd+ipd, H)
    w1s = jnp.concatenate([p["ws1f"], p["ws1x"]], axis=0)
    cat = w1t.shape[0]
    w1 = jnp.zeros((Pp, Hp), jnp.float32)
    w1 = w1.at[:cat, :hidden].set(w1t)
    w1 = w1.at[:cat, hidden:2 * hidden].set(w1s)
    b1 = jnp.zeros((1, Hp), jnp.float32)
    b1 = b1.at[:, :hidden].set(p["bt1"])
    b1 = b1.at[:, hidden:2 * hidden].set(p["bs1"])

    # second layers: block diagonal (keeps the two halves separate)
    w2 = jnp.zeros((Hp, Hp), jnp.float32)
    w2 = w2.at[:hidden, :hidden].set(p["wt2"])
    w2 = w2.at[hidden:2 * hidden, hidden:2 * hidden].set(p["ws2"])
    b2 = jnp.zeros((1, Hp), jnp.float32)
    b2 = b2.at[:, :hidden].set(p["bt2"])
    b2 = b2.at[:, hidden:2 * hidden].set(p["bs2"])

    # third layers: t into lanes [0, Dp), s into lanes [Dp, 2*Dp)
    w3 = jnp.zeros((Hp, 2 * Dp), jnp.float32)
    w3 = w3.at[:hidden, :input_dim].set(p["wt3"])
    w3 = w3.at[hidden:2 * hidden, Dp:Dp + input_dim].set(p["ws3"])
    b3 = jnp.zeros((1, 2 * Dp), jnp.float32)
    b3 = b3.at[:, :input_dim].set(p["bt3"])
    b3 = b3.at[:, Dp:Dp + input_dim].set(p["bs3"])

    return dict(
        wp=wp.astype(jnp.bfloat16), bp=bp,
        w1=w1.astype(jnp.bfloat16), b1=b1,
        w2=w2.astype(jnp.bfloat16), b2=b2,
        w3=w3.astype(jnp.bfloat16), b3=b3,
        dims=dict(Kp=Kp, Pp=Pp, Hp=Hp, Dp=Dp,
                  feat_dim=feat_dim, input_dim=input_dim),
    )


# --------------------------------------------------------------------------- #
# Wrapper: batch-tiled, pipelined pallas_call
# --------------------------------------------------------------------------- #
def residual_block(F, x, packed, *, batch_tile=256):
    d = packed["dims"]
    Kp, Pp, Hp, Dp = d["Kp"], d["Pp"], d["Hp"], d["Dp"]
    feat_dim, input_dim = d["feat_dim"], d["input_dim"]
    B = x.shape[0]

    # batch tile: fixed 256 rows for big batches (fits comfortably in v7x's
    # 64 MiB VMEM with double buffering), single 8-aligned tile for small B.
    TB = batch_tile if B >= batch_tile else _round_up(max(B, 1), 8)
    B_pad = _round_up(B, TB)

    # Layout plumbing in the wrapper: pack [F | x] and pad to lane multiples.
    Fx = jnp.zeros((B_pad, Kp), jnp.float32)
    Fx = Fx.at[:B, :feat_dim].set(F)
    Fx = Fx.at[:B, feat_dim:feat_dim + input_dim].set(x)
    Fx = Fx.astype(jnp.bfloat16)
    x_pad = jnp.zeros((B_pad, Dp), x.dtype).at[:B, :input_dim].set(x)

    w = packed
    grid = (B_pad // TB,)

    batch_spec = lambda cols: pl.BlockSpec((TB, cols), lambda i: (i, 0))
    const_spec = lambda arr: pl.BlockSpec(arr.shape, lambda i: (0, 0))  # resident

    flops = 2 * B_pad * (Kp * Pp + Pp * Hp + Hp * Hp + Hp * 2 * Dp)
    bytes_accessed = int(
        Fx.nbytes + x_pad.nbytes + B_pad * Dp * 4
        + sum(w[k].nbytes for k in ("wp", "bp", "w1", "b1", "w2", "b2", "w3", "b3"))
    )
    cost = pl.CostEstimate(flops=flops, transcendentals=B_pad * Dp,
                           bytes_accessed=bytes_accessed)

    out = pl.pallas_call(
        residual_block_kernel,
        out_shape=jax.ShapeDtypeStruct((B_pad, Dp), x.dtype),
        grid=grid,
        in_specs=[
            batch_spec(Kp),             # Fx  (bf16)
            batch_spec(Dp),             # x   (f32, for the residual epilogue)
            const_spec(w["wp"]), const_spec(w["bp"]),
            const_spec(w["w1"]), const_spec(w["b1"]),
            const_spec(w["w2"]), const_spec(w["b2"]),
            const_spec(w["w3"]), const_spec(w["b3"]),
        ],
        out_specs=batch_spec(Dp),
        compiler_params=pltpu.CompilerParams(
            dimension_semantics=("parallel",),
        ),
        cost_estimate=cost,
    )(Fx, x_pad,
      w["wp"], w["bp"], w["w1"], w["b1"], w["w2"], w["b2"], w["w3"], w["b3"])

    return out[:B, :input_dim]


# --------------------------------------------------------------------------- #
# Pure-JAX references
# --------------------------------------------------------------------------- #
def residual_block_ref(F, x, p):
    """Full-precision (f32) reference mirroring the PyTorch forward()."""
    Fp = F @ p["wf"] + p["bf"]
    xp = x @ p["wx"] + p["bx"]
    Fx = jnp.concatenate([Fp, xp], axis=-1)
    w1t = jnp.concatenate([p["wt1f"], p["wt1x"]], axis=0)
    w1s = jnp.concatenate([p["ws1f"], p["ws1x"]], axis=0)
    h = jnp.maximum(Fx @ w1t + p["bt1"], 0.0)
    h = jnp.maximum(h @ p["wt2"] + p["bt2"], 0.0)
    t = h @ p["wt3"] + p["bt3"]
    g = jnp.maximum(Fx @ w1s + p["bs1"], 0.0)
    g = jnp.maximum(g @ p["ws2"] + p["bs2"], 0.0)
    s = jnp.clip(g @ p["ws3"] + p["bs3"], -2.0, 2.0)
    return (x - t) * jnp.exp(-s)


def residual_block_ref_bf16(F, x, p):
    """Reference with the same precision policy as the kernel
    (bf16 matmul operands, f32 accumulation & epilogue) but NONE of the
    fusion/padding/tiling — checks the kernel's structural transforms."""
    bf = jnp.bfloat16

    def mm(a, w):
        return jnp.dot(a.astype(bf), w.astype(bf),
                       preferred_element_type=jnp.float32)

    Fp = mm(F, p["wf"]) + p["bf"]
    xp = mm(x, p["wx"]) + p["bx"]
    Fx = jnp.concatenate([Fp, xp], axis=-1)
    w1t = jnp.concatenate([p["wt1f"], p["wt1x"]], axis=0)
    w1s = jnp.concatenate([p["ws1f"], p["ws1x"]], axis=0)
    h = jnp.maximum(mm(Fx, w1t) + p["bt1"], 0.0)
    h = jnp.maximum(mm(h, p["wt2"]) + p["bt2"], 0.0)
    t = mm(h, p["wt3"]) + p["bt3"]
    g = jnp.maximum(mm(Fx, w1s) + p["bs1"], 0.0)
    g = jnp.maximum(mm(g, p["ws2"]) + p["bs2"], 0.0)
    s = jnp.clip(mm(g, p["ws3"]) + p["bs3"], -2.0, 2.0)
    return (x - t) * jnp.exp(-s)


def make_params(key, *, feat_dim, input_dim, feat_proj_dim, input_proj_dim, hidden):
    cat_dim = feat_proj_dim + input_proj_dim
    names_shapes = [
        ("wf", (feat_dim, feat_proj_dim)), ("bf", (1, feat_proj_dim)),
        ("wx", (input_dim, input_proj_dim)), ("bx", (1, input_proj_dim)),
        ("wt1f", (feat_proj_dim, hidden)), ("wt1x", (input_proj_dim, hidden)),
        ("bt1", (1, hidden)),
        ("wt2", (hidden, hidden)), ("bt2", (1, hidden)),
        ("wt3", (hidden, input_dim)), ("bt3", (1, input_dim)),
        ("ws1f", (feat_proj_dim, hidden)), ("ws1x", (input_proj_dim, hidden)),
        ("bs1", (1, hidden)),
        ("ws2", (hidden, hidden)), ("bs2", (1, hidden)),
        ("ws3", (hidden, input_dim)), ("bs3", (1, input_dim)),
    ]
    params = {}
    keys = jax.random.split(key, len(names_shapes))
    for k, (name, shape) in zip(keys, names_shapes):
        fan_in = shape[0] if name.startswith("w") else cat_dim
        scale = 1.0 / jnp.sqrt(jnp.float32(fan_in))
        params[name] = scale * jax.random.normal(k, shape, jnp.float32)
    return params


if __name__ == "__main__":
    B = 8
    feat_dim = 32        # dim of F fed to feature_proj
    input_dim = 32       # dim of x (and of t / s outputs)
    feat_proj_dim = 16   # feature_proj.proj_dim
    input_proj_dim = 16  # input_proj.proj_dim
    hidden = 32          # hidden_size

    root = jax.random.PRNGKey(0)
    k_f, k_x, k_p = jax.random.split(root, 3)
    F = jax.random.normal(k_f, (B, feat_dim), jnp.float32)
    x = jax.random.normal(k_x, (B, input_dim), jnp.float32)
    params = make_params(k_p, feat_dim=feat_dim, input_dim=input_dim,
                         feat_proj_dim=feat_proj_dim,
                         input_proj_dim=input_proj_dim, hidden=hidden)
    packed = pack_params(params, feat_dim=feat_dim, input_dim=input_dim,
                         feat_proj_dim=feat_proj_dim,
                         input_proj_dim=input_proj_dim, hidden=hidden)

    out = residual_block(F, x, packed)
    jax.block_until_ready(out)

    assert out.shape == (B, input_dim)
    # Structural correctness (fusion / block-diag packing / padding / tiling):
    ref_bf16 = residual_block_ref_bf16(F, x, params)
    assert jnp.allclose(out, ref_bf16, atol=1e-2, rtol=1e-2)
    # Sanity vs. the full-precision module forward (bf16 matmuls -> loose tol):
    ref_f32 = residual_block_ref(F, x, params)
    assert jnp.allclose(out, ref_f32, atol=2.5e-1, rtol=1e-1)
    print("KERNEL_OK")
</pallas_src>

<mosaic_0001>
module attributes {stable_mosaic.version = 11 : i64} {
  func.func @residual_block_kernel(%arg0: i32, %arg1: memref<8x128xbf16, #tpu.memory_space<vmem>>, %arg2: memref<8x128xf32, #tpu.memory_space<vmem>>, %arg3: memref<128x128xbf16, #tpu.memory_space<vmem>>, %arg4: memref<1x128xf32, #tpu.memory_space<vmem>>, %arg5: memref<128x128xbf16, #tpu.memory_space<vmem>>, %arg6: memref<1x128xf32, #tpu.memory_space<vmem>>, %arg7: memref<128x128xbf16, #tpu.memory_space<vmem>>, %arg8: memref<1x128xf32, #tpu.memory_space<vmem>>, %arg9: memref<128x256xbf16, #tpu.memory_space<vmem>>, %arg10: memref<1x256xf32, #tpu.memory_space<vmem>>, %arg11: memref<8x128xf32, #tpu.memory_space<vmem>>) attributes {dimension_semantics = [#tpu.dimension_semantics<parallel>], iteration_bounds = array<i64: 1>, scalar_prefetch = 0 : i64, scratch_operands = 0 : i64, tpu.core_type = #tpu.core_type<tc>, window_params = [{transform_indices = @transform_0, window_bounds = array<i64: 8, 128>}, {transform_indices = @transform_1, window_bounds = array<i64: 8, 128>}, {pipeline_mode = #tpu.pipeline_mode<synchronous>, transform_indices = @transform_2, window_bounds = array<i64: 128, 128>}, {pipeline_mode = #tpu.pipeline_mode<synchronous>, transform_indices = @transform_3, window_bounds = array<i64: 1, 128>}, {pipeline_mode = #tpu.pipeline_mode<synchronous>, transform_indices = @transform_4, window_bounds = array<i64: 128, 128>}, {pipeline_mode = #tpu.pipeline_mode<synchronous>, transform_indices = @transform_5, window_bounds = array<i64: 1, 128>}, {pipeline_mode = #tpu.pipeline_mode<synchronous>, transform_indices = @transform_6, window_bounds = array<i64: 128, 128>}, {pipeline_mode = #tpu.pipeline_mode<synchronous>, transform_indices = @transform_7, window_bounds = array<i64: 1, 128>}, {pipeline_mode = #tpu.pipeline_mode<synchronous>, transform_indices = @transform_8, window_bounds = array<i64: 128, 256>}, {pipeline_mode = #tpu.pipeline_mode<synchronous>, transform_indices = @transform_9, window_bounds = array<i64: 1, 256>}, {transform_indices = @transform_10, window_bounds = array<i64: 8, 128>}]} {
    %c0 = arith.constant 0 : index
    %c0_0 = arith.constant 0 : index
    %0 = vector.load %arg1[%c0, %c0_0] : memref<8x128xbf16, #tpu.memory_space<vmem>>, vector<8x128xbf16>
    %c0_1 = arith.constant 0 : index
    %c0_2 = arith.constant 0 : index
    %1 = vector.load %arg3[%c0_1, %c0_2] : memref<128x128xbf16, #tpu.memory_space<vmem>>, vector<128x128xbf16>
    %cst = arith.constant dense<0.000000e+00> : vector<8x128xf32>
    %2 = tpu.matmul %0, %1, %cst {dimension_numbers = #tpu.dot_dimension_numbers<[1], [0], [0], [1], [0, 0, 1, 1], [], []>} : vector<8x128xbf16>, vector<128x128xbf16>, vector<8x128xf32> -> vector<8x128xf32>
    %c0_3 = arith.constant 0 : index
    %c0_4 = arith.constant 0 : index
    %3 = vector.load %arg4[%c0_3, %c0_4] : memref<1x128xf32, #tpu.memory_space<vmem>>, vector<1x128xf32>
    %4 = vector.broadcast %3 : vector<1x128xf32> to vector<8x128xf32>
    %5 = arith.addf %2, %4 : vector<8x128xf32>
    %6 = arith.truncf %5 : vector<8x128xf32> to vector<8x128xbf16>
    %c0_5 = arith.constant 0 : index
    %c0_6 = arith.constant 0 : index
    %7 = vector.load %arg5[%c0_5, %c0_6] : memref<128x128xbf16, #tpu.memory_space<vmem>>, vector<128x128xbf16>
    %cst_7 = arith.constant dense<0.000000e+00> : vector<8x128xf32>
    %8 = tpu.matmul %6, %7, %cst_7 {dimension_numbers = #tpu.dot_dimension_numbers<[1], [0], [0], [1], [0, 0, 1, 1], [], []>} : vector<8x128xbf16>, vector<128x128xbf16>, vector<8x128xf32> -> vector<8x128xf32>
    %c0_8 = arith.constant 0 : index
    %c0_9 = arith.constant 0 : index
    %9 = vector.load %arg6[%c0_8, %c0_9] : memref<1x128xf32, #tpu.memory_space<vmem>>, vector<1x128xf32>
    %10 = vector.broadcast %9 : vector<1x128xf32> to vector<8x128xf32>
    %11 = arith.addf %8, %10 : vector<8x128xf32>
    %cst_10 = arith.constant 0.000000e+00 : f32
    %12 = vector.broadcast %cst_10 : f32 to vector<8x128xf32>
    %13 = arith.maximumf %11, %12 : vector<8x128xf32>
    %14 = arith.truncf %13 : vector<8x128xf32> to vector<8x128xbf16>
    %c0_11 = arith.constant 0 : index
    %c0_12 = arith.constant 0 : index
    %15 = vector.load %arg7[%c0_11, %c0_12] : memref<128x128xbf16, #tpu.memory_space<vmem>>, vector<128x128xbf16>
    %cst_13 = arith.constant dense<0.000000e+00> : vector<8x128xf32>
    %16 = tpu.matmul %14, %15, %cst_13 {dimension_numbers = #tpu.dot_dimension_numbers<[1], [0], [0], [1], [0, 0, 1, 1], [], []>} : vector<8x128xbf16>, vector<128x128xbf16>, vector<8x128xf32> -> vector<8x128xf32>
    %c0_14 = arith.constant 0 : index
    %c0_15 = arith.constant 0 : index
    %17 = vector.load %arg8[%c0_14, %c0_15] : memref<1x128xf32, #tpu.memory_space<vmem>>, vector<1x128xf32>
    %18 = vector.broadcast %17 : vector<1x128xf32> to vector<8x128xf32>
    %19 = arith.addf %16, %18 : vector<8x128xf32>
    %cst_16 = arith.constant 0.000000e+00 : f32
    %20 = vector.broadcast %cst_16 : f32 to vector<8x128xf32>
    %21 = arith.maximumf %19, %20 : vector<8x128xf32>
    %22 = arith.truncf %21 : vector<8x128xf32> to vector<8x128xbf16>
    %c0_17 = arith.constant 0 : index
    %c0_18 = arith.constant 0 : index
    %23 = vector.load %arg9[%c0_17, %c0_18] : memref<128x256xbf16, #tpu.memory_space<vmem>>, vector<128x256xbf16>
    %cst_19 = arith.constant dense<0.000000e+00> : vector<8x256xf32>
    %24 = tpu.matmul %22, %23, %cst_19 {dimension_numbers = #tpu.dot_dimension_numbers<[1], [0], [0], [1], [0, 0, 1, 1], [], []>} : vector<8x128xbf16>, vector<128x256xbf16>, vector<8x256xf32> -> vector<8x256xf32>
    %c0_20 = arith.constant 0 : index
    %c0_21 = arith.constant 0 : index
    %25 = vector.load %arg10[%c0_20, %c0_21] : memref<1x256xf32, #tpu.memory_space<vmem>>, vector<1x256xf32>
    %26 = vector.broadcast %25 : vector<1x256xf32> to vector<8x256xf32>
    %27 = arith.addf %24, %26 : vector<8x256xf32>
    %28 = vector.extract_strided_slice %27 {offsets = [0, 0], sizes = [8, 128], strides = [1, 1]} : vector<8x256xf32> to vector<8x128xf32>
    %29 = vector.extract_strided_slice %27 {offsets = [0, 128], sizes = [8, 128], strides = [1, 1]} : vector<8x256xf32> to vector<8x128xf32>
    %cst_22 = arith.constant -2.000000e+00 : f32
    %cst_23 = arith.constant 2.000000e+00 : f32
    %30 = vector.broadcast %cst_22 : f32 to vector<8x128xf32>
    %31 = arith.maximumf %30, %29 : vector<8x128xf32>
    %32 = vector.broadcast %cst_23 : f32 to vector<8x128xf32>
    %33 = arith.minimumf %32, %31 : vector<8x128xf32>
    %c0_24 = arith.constant 0 : index
    %c0_25 = arith.constant 0 : index
    %34 = vector.load %arg2[%c0_24, %c0_25] : memref<8x128xf32, #tpu.memory_space<vmem>>, vector<8x128xf32>
    %35 = arith.subf %34, %28 : vector<8x128xf32>
    %cst_26 = arith.constant 0.000000e+00 : f32
    %36 = vector.broadcast %cst_26 : f32 to vector<8x128xf32>
    %37 = arith.subf %36, %33 : vector<8x128xf32>
    %38 = math.exp %37 : vector<8x128xf32>
    %39 = arith.mulf %35, %38 : vector<8x128xf32>
    %c0_27 = arith.constant 0 : index
    %c0_28 = arith.constant 0 : index
    %40 = vector.load %arg11[%c0_27, %c0_28] : memref<8x128xf32, #tpu.memory_space<vmem>>, vector<8x128xf32>
    tpu.vector_store %arg11[%c0_27, %c0_28], %39 {strides = array<i32>} : memref<8x128xf32, #tpu.memory_space<vmem>>, vector<8x128xf32>,
    return
  }
  func.func @transform_0(%arg0: i32) -> (i32, i32) {
    %c0_i32 = arith.constant 0 : i32
    %c0_i32_0 = arith.constant 0 : i32
    return %arg0, %c0_i32 : i32, i32
  }
  func.func @transform_1(%arg0: i32) -> (i32, i32) {
    %c0_i32 = arith.constant 0 : i32
    %c0_i32_0 = arith.constant 0 : i32
    return %arg0, %c0_i32 : i32, i32
  }
  func.func @transform_2(%arg0: i32) -> (i32, i32) {
    %c0_i32 = arith.constant 0 : i32
    %c0_i32_0 = arith.constant 0 : i32
    %c0_i32_1 = arith.constant 0 : i32
    return %c0_i32, %c0_i32_0 : i32, i32
  }
  func.func @transform_3(%arg0: i32) -> (i32, i32) {
    %c0_i32 = arith.constant 0 : i32
    %c0_i32_0 = arith.constant 0 : i32
    %c0_i32_1 = arith.constant 0 : i32
    return %c0_i32, %c0_i32_0 : i32, i32
  }
  func.func @transform_4(%arg0: i32) -> (i32, i32) {
    %c0_i32 = arith.constant 0 : i32
    %c0_i32_0 = arith.constant 0 : i32
    %c0_i32_1 = arith.constant 0 : i32
    return %c0_i32, %c0_i32_0 : i32, i32
  }
  func.func @transform_5(%arg0: i32) -> (i32, i32) {
    %c0_i32 = arith.constant 0 : i32
    %c0_i32_0 = arith.constant 0 : i32
    %c0_i32_1 = arith.constant 0 : i32
    return %c0_i32, %c0_i32_0 : i32, i32
  }
  func.func @transform_6(%arg0: i32) -> (i32, i32) {
    %c0_i32 = arith.constant 0 : i32
    %c0_i32_0 = arith.constant 0 : i32
    %c0_i32_1 = arith.constant 0 : i32
    return %c0_i32, %c0_i32_0 : i32, i32
  }
  func.func @transform_7(%arg0: i32) -> (i32, i32) {
    %c0_i32 = arith.constant 0 : i32
    %c0_i32_0 = arith.constant 0 : i32
    %c0_i32_1 = arith.constant 0 : i32
    return %c0_i32, %c0_i32_0 : i32, i32
  }
  func.func @transform_8(%arg0: i32) -> (i32, i32) {
    %c0_i32 = arith.constant 0 : i32
    %c0_i32_0 = arith.constant 0 : i32
    %c0_i32_1 = arith.constant 0 : i32
    return %c0_i32, %c0_i32_0 : i32, i32
  }
  func.func @transform_9(%arg0: i32) -> (i32, i32) {
    %c0_i32 = arith.constant 0 : i32
    %c0_i32_0 = arith.constant 0 : i32
    %c0_i32_1 = arith.constant 0 : i32
    return %c0_i32, %c0_i32_0 : i32, i32
  }
  func.func @transform_10(%arg0: i32) -> (i32, i32) {
    %c0_i32 = arith.constant 0 : i32
    %c0_i32_0 = arith.constant 0 : i32
    return %arg0, %c0_i32 : i32, i32
  }
}

</mosaic_0001>

<bundles_post_ra>
// kernel: tpu_custom_call.1
= control target key start
LH: loop header
LB: loop body
LE: loop exit
PB: predicated region body
PF: predicated region fallthrough
CT: control target
= control target key end

     0   :  { %15 = vsyncpa [#allocation3], 0  ;;  %s1026_s0 = inlined_call_operand.hbm [shape: bf16[8,128], index: 0, kind: input, shape index: {}]   ;;  %s1027_s1 = inlined_call_operand.hbm [shape: f32[8,128], index: 1, kind: input, shape index: {}]   ;;  %s1028_s2 = inlined_call_operand.hbm [shape: bf16[128,128], index: 2, kind: input, shape index: {}]   ;;  %s1029_s3 = inlined_call_operand.vmem [shape: f32[1,128], index: 3, kind: input, shape index: {}]   ;;  %s1030_s4 = inlined_call_operand.hbm [shape: bf16[128,128], index: 4, kind: input, shape index: {}]   ;;  %s1031_s5 = inlined_call_operand.vmem [shape: f32[1,128], index: 5, kind: input, shape index: {}]   ;;  %s1032_s6 = inlined_call_operand.hbm [shape: bf16[128,128], index: 6, kind: input, shape index: {}]   ;;  %s1033_s7 = inlined_call_operand.vmem [shape: f32[1,128], index: 7, kind: input, shape index: {}]   ;;  %s1034_s8 = inlined_call_operand.hbm [shape: bf16[128,256], index: 8, kind: input, shape index: {}]   ;;  %s1035_s9 = inlined_call_operand.vmem [shape: f32[1,256], index: 9, kind: input, shape index: {}]   ;;  %s1036_s10 = inlined_call_operand.hbm [shape: f32[8,128], index: 10, kind: output, shape index: {}]  }
   0x1   :  { %16 = vsyncpa [#allocation6], 0 }
   0x2   :  { %17 = vsyncpa [#allocation9], 0 }
   0x3   :  { %18 = vsyncpa [#allocation12], 0  ;;  %s36_s15 = sshll.u32 %s1027_s1, 4  ;;  %s37_s15 = int_to_ptr.hbm [resolvable:$true] %s36_s15 }
   0x4   :  { %19 = vsyncpa [#allocation4], 0  ;;  %s927_s16 = smov [#allocation5]   ;;  %s61_s20 = sshll.u32 %s1030_s4, 4  ;;  %s62_s20 = int_to_ptr.hbm [resolvable:$true] %s61_s20 }
   0x5   :  { %s38_s17 = sshll.u32 %s927_s16, 4  ;;  %s928_s21 = smov [#allocation8]   ;;  %s39_s17 = int_to_ptr.vmem [resolvable:$true] %s38_s17 }
   0x6   :  { %41 = dma.hbm_to_vmem [thread:$0]  %s37_s15, 128, %s39_s17, [#allocation6]  }
   0x7   :  { %s63_s22 = sshll.u32 %s928_s21, 4  ;;  %s25_s25 = sshll.u32 %s1026_s0, 4  ;;  %s64_s22 = int_to_ptr.vmem [resolvable:$true] %s63_s22  ;;  %s26_s25 = int_to_ptr.hbm [resolvable:$true] %s25_s25 }
   0x8   :  { %s929_s1 = smov 64   ;;  %s930_s26 = smov 4  }
   0x9   :  { %69 = dma.hbm_to_vmem [thread:$0]  %s62_s20, 1024, %s64_s22, [#allocation9], %s929_s1, %s929_s1, %s930_s26  }
   0xa   :  { %s46_s29 = sshll.u32 %s1028_s2, 4  ;;  %s931_s30 = smov [#allocation2]   ;;  %s47_s29 = int_to_ptr.hbm [resolvable:$true] %s46_s29 }
   0xb   :  { %s27_s11 = sshll.u32 %s931_s30, 4  ;;  %s932_s4 = smov [#allocation7]   ;;  %s28_s11 = int_to_ptr.vmem [resolvable:$true] %s27_s11 }
   0xc   :  { %30 = dma.hbm_to_vmem [thread:$0]  %s26_s25, 64, %s28_s11, [#allocation3]  }
   0xd   :  { %s48_s12 = sshll.u32 %s932_s4, 4  ;;  %s76_s0 = sshll.u32 %s1032_s6, 4  ;;  %s49_s12 = int_to_ptr.vmem [resolvable:$true] %s48_s12  ;;  %s77_s0 = int_to_ptr.hbm [resolvable:$true] %s76_s0 }
   0xe   :  { %54 = dma.hbm_to_vmem [thread:$0]  %s47_s29, 1024, %s49_s12, [#allocation6], %s929_s1, %s929_s1, %s930_s26  }
   0xf   :  { %s91_s17 = sshll.u32 %s1034_s8, 4  ;;  %s933_s18 = smov [#allocation10]   ;;  %s92_s17 = int_to_ptr.hbm [resolvable:$true] %s91_s17 }
  0x10   :  { %s78_s2 = sshll.u32 %s933_s18, 4  ;;  %s934_s19 = smov [#allocation11]   ;;  %s79_s2 = int_to_ptr.vmem [resolvable:$true] %s78_s2 }
  0x11   :  { %84 = dma.hbm_to_vmem [thread:$0]  %s77_s0, 1024, %s79_s2, [#allocation9], %s929_s1, %s929_s1, %s930_s26  }
  0x12   :  { %s93_s20 = sshll.u32 %s934_s19, 4  ;;  %s935_s21 = smov 128   ;;  %s94_s20 = int_to_ptr.vmem [resolvable:$true] %s93_s20 }
  0x13   :  { %s936_s22 = smov 8  }
  0x14   :  { %99 = dma.hbm_to_vmem [thread:$0]  %s92_s17, 2048, %s94_s20, [#allocation12], %s935_s21, %s935_s21, %s936_s22  }
  0x15   :  { %917 = dma.done.wait [#allocation3], 64  }
  0x16   :  { %918 = vsyncadd [#allocation3], 4294967232 }
  0x17   :  { %919 = dma.done.wait [#allocation6], 1152  }
  0x18   :  { %920 = vsyncadd [#allocation6], 4294966144 }
  0x19   :  { %921 = dma.done.wait [#allocation9], 2048  }
  0x1a   :  { %922 = vsyncadd [#allocation9], 4294965248 }
  0x1b   :  { %923 = dma.done.wait [#allocation12], 2048  }
  0x1c   :  { %924 = vsyncadd [#allocation12], 4294965248  ;;  %v700_v0 = vld [vmem:[#allocation7 + $0x38] sm:$0xff]  ;;  %v699_v1 = vld [vmem:[#allocation7 + $0x30] sm:$0xff]  ;;  %s519_s29 = sshll.u32 %s1036_s10, 4  ;;  %s520_s29 = int_to_ptr.hbm [resolvable:$true] %s519_s29 }
  0x1d   :  { %195 = vmatpush.bf16.msra.mxu0 %v700_v0  ;;  %v708_v2 = vld [vmem:[#allocation8 + $0x38] sm:$0xff]  ;;  %v707_v3 = vld [vmem:[#allocation8 + $0x30] sm:$0xff]  ;;  %v698_v4 = vld [vmem:[#allocation7 + $0x28] sm:$0xff] }
  0x1e   :  { %277 = vmatpush.bf16.msra.mxu1 %v708_v2  ;;  %v706_v5 = vld [vmem:[#allocation8 + $0x28] sm:$0xff]  ;;  %v697_v6 = vld [vmem:[#allocation7 + $0x20] sm:$0xff]  ;;  %v696_v8 = vld [vmem:[#allocation7 + $0x18] sm:$0xff] }
  0x1f   :  { %v705_v7 = vld [vmem:[#allocation8 + $0x20] sm:$0xff]  ;;  %v704_v9 = vld [vmem:[#allocation8 + $0x18] sm:$0xff]  ;;  %v695_v10 = vld [vmem:[#allocation7 + $0x10] sm:$0xff] }
  0x20   :  { %v703_v11 = vld [vmem:[#allocation8 + $0x10] sm:$0xff]  ;;  %v694_v12 = vld [vmem:[#allocation7 + $0x8] sm:$0xff]  ;;  %v693_v14 = vld [vmem:[#allocation7] sm:$0xff] }
  0x21   :  { %196 = vmatpush.bf16.msra.mxu0 %v699_v1  ;;  %v702_v13 = vld [vmem:[#allocation8 + $0x8] sm:$0xff]  ;;  %v126_v15 = vld [vmem:[#allocation2] sm:$0xf]  ;;  %v701_v16 = vld [vmem:[#allocation8] sm:$0xff] }
  0x22   :  { %278 = vmatpush.bf16.msra.mxu1 %v707_v3  ;;  %v716_v17 = vld [vmem:[#allocation10 + $0x38] sm:$0xff]  ;;  %v715_v18 = vld [vmem:[#allocation10 + $0x30] sm:$0xff]  ;;  %v714_v19 = vld [vmem:[#allocation10 + $0x28] sm:$0xff] }
  0x23   :  { %360 = vmatpush.bf16.msra.mxu2 %v716_v17  ;;  %v713_v20 = vld [vmem:[#allocation10 + $0x20] sm:$0xff]  ;;  %v712_v21 = vld [vmem:[#allocation10 + $0x18] sm:$0xff]  ;;  %v711_v22 = vld [vmem:[#allocation10 + $0x10] sm:$0xff] }
  0x24   :  { %v744_v23 = vld [vmem:[%s1029_s3] ss:$0 sm:$0xff]  ;;  %v710_v28 = vld [vmem:[#allocation10 + $0x8] sm:$0xff]  ;;  %v709_v29 = vld [vmem:[#allocation10] sm:$0xff] }
  0x25   :  { %197 = vmatpush.bf16.msra.mxu0 %v698_v4  ;;  %v686_v30 = vld [vmem:[#allocation11 + $0x70] sm:$0xf]  ;;  %v732_v31 = vld [vmem:[#allocation11 + $0x74] sm:$0xf0]  ;;  %v731_v32 = vld [vmem:[#allocation11 + $0x74] sm:$0xf] }
  0x26   :  { %279 = vmatpush.bf16.msra.mxu1 %v706_v5  ;;  %v687_v33 = vor.u32 %v732_v31, %v686_v30  ;;  %v688_v34 = vld [vmem:[#allocation11 + $0x78] sm:$0xf0]  ;;  %v678_v35 = vld [vmem:[#allocation11 + $0x60] sm:$0xf]  ;;  %v730_v36 = vld [vmem:[#allocation11 + $0x64] sm:$0xf0] }
  0x27   :  { %361 = vmatpush.bf16.msra.mxu2 %v715_v18  ;;  %v691_v37 = vor.u32 %v731_v32, %v688_v34  ;;  %v729_v38 = vld [vmem:[#allocation11 + $0x64] sm:$0xf]  ;;  %v680_v39 = vld [vmem:[#allocation11 + $0x68] sm:$0xf0]  ;;  %v679_v40 = vor.u32 %v730_v36, %v678_v35  ;;  %v670_v42 = vld [vmem:[#allocation11 + $0x50] sm:$0xf] }
  0x28   :  { %477 = vmatpush.bf16.msra.mxu3 %v687_v33  ;;  %v683_v41 = vor.u32 %v729_v38, %v680_v39  ;;  %v728_v43 = vld [vmem:[#allocation11 + $0x54] sm:$0xf0]  ;;  %v727_v44 = vld [vmem:[#allocation11 + $0x54] sm:$0xf]  ;;  %v672_v45 = vld [vmem:[#allocation11 + $0x58] sm:$0xf0] }
  0x29   :  { %198 = vmatpush.bf16.msra.mxu0 %v697_v6  ;;  %v671_v46 = vor.u32 %v728_v43, %v670_v42  ;;  %v675_v47 = vor.u32 %v727_v44, %v672_v45  ;;  %v662_v48 = vld [vmem:[#allocation11 + $0x40] sm:$0xf]  ;;  %v726_v49 = vld [vmem:[#allocation11 + $0x44] sm:$0xf0]  ;;  %v725_v50 = vld [vmem:[#allocation11 + $0x44] sm:$0xf] }
  0x2a   :  { %280 = vmatpush.bf16.msra.mxu1 %v705_v7  ;;  %v664_v51 = vld [vmem:[#allocation11 + $0x48] sm:$0xf0]  ;;  %v663_v52 = vor.u32 %v726_v49, %v662_v48  ;;  %v654_v54 = vld [vmem:[#allocation11 + $0x30] sm:$0xf]  ;;  %v724_v55 = vld [vmem:[#allocation11 + $0x34] sm:$0xf0] }
  0x2b   :  { %362 = vmatpush.bf16.msra.mxu2 %v714_v19  ;;  %v667_v53 = vor.u32 %v725_v50, %v664_v51  ;;  %v723_v56 = vld [vmem:[#allocation11 + $0x34] sm:$0xf]  ;;  %v656_v57 = vld [vmem:[#allocation11 + $0x38] sm:$0xf0]  ;;  %v655_v58 = vor.u32 %v724_v55, %v654_v54  ;;  %v646_v60 = vld [vmem:[#allocation11 + $0x20] sm:$0xf] }
  0x2c   :  { %478 = vmatpush.bf16.msra.mxu3 %v679_v40  ;;  %v659_v59 = vor.u32 %v723_v56, %v656_v57  ;;  %v722_v61 = vld [vmem:[#allocation11 + $0x24] sm:$0xf0]  ;;  %v721_v62 = vld [vmem:[#allocation11 + $0x24] sm:$0xf]  ;;  %v648_v63 = vld [vmem:[#allocation11 + $0x28] sm:$0xf0] }
  0x2d   :  { %199 = vmatpush.bf16.msra.mxu0 %v696_v8  ;;  %v647_v0 = vor.u32 %v722_v61, %v646_v60  ;;  %v651_v1 = vor.u32 %v721_v62, %v648_v63  ;;  %v745_v2 = vld [vmem:[%s1031_s5] ss:$0 sm:$0xff]  ;;  %v638_v8 = vld [vmem:[#allocation11 + $0x10] sm:$0xf]  ;;  %v632_v18 = vld [vmem:[#allocation11 + $0x8] sm:$0xf0] }
  0x2e   :  { %281 = vmatpush.bf16.msra.mxu1 %v704_v9  ;;  %v720_v9 = vld [vmem:[#allocation11 + $0x14] sm:$0xf0] }
  0x2f   :  { %363 = vmatpush.bf16.msra.mxu2 %v713_v20  ;;  %v746_v20 = vld [vmem:[%s1033_s7] ss:$0 sm:$0xff]  ;;  %s937_s7 = smov [#allocation13]  }
  0x30   :  { %479 = vmatpush.bf16.msra.mxu3 %v671_v46  ;;  %s517_s26 = sshll.u32 %s937_s7, 4  ;;  %s518_s26 = int_to_ptr.vmem [resolvable:$true] %s517_s26 }
  0x31   :  { %200 = vmatpush.bf16.msra.mxu0 %v695_v10  ;;  %v719_v10 = vld [vmem:[#allocation11 + $0x14] sm:$0xf] }
  0x32   :  { %282 = vmatpush.bf16.msra.mxu1 %v703_v11  ;;  %v639_v11 = vor.u32 %v720_v9, %v638_v8 }
  0x33   :  { %364 = vmatpush.bf16.msra.mxu2 %v712_v21 }
  0x34   :  { %480 = vmatpush.bf16.msra.mxu3 %v663_v52 }
  0x35   :  { %201 = vmatpush.bf16.msra.mxu0 %v694_v12  ;;  %v640_v12 = vld [vmem:[#allocation11 + $0x18] sm:$0xf0] }
  0x36   :  { %283 = vmatpush.bf16.msra.mxu1 %v702_v13  ;;  %v643_v13 = vor.u32 %v719_v10, %v640_v12 }
  0x37   :  { %365 = vmatpush.bf16.msra.mxu2 %v711_v22 }
  0x38   :  { %481 = vmatpush.bf16.msra.mxu3 %v655_v58 }
  0x39   :  { %202 = vmatpush.bf16.msra.mxu0 %v693_v14  ;;  %v630_v14 = vld [vmem:[#allocation11] sm:$0xf] }
  0x3a   :  { %284 = vmatpush.bf16.msra.mxu1 %v701_v16  ;;  %v717_v16 = vld [vmem:[#allocation11 + $0x4] sm:$0xf] }
  0x3b   :  { %366 = vmatpush.bf16.msra.mxu2 %v710_v28  ;;  %v635_v19 = vor.u32 %v717_v16, %v632_v18 }
  0x3c   :  { %203 = vmatmul.bf16.vlgmr.msra.gmra.mxu0 %v126_v15  ;;  %482 = vmatpush.bf16.msra.mxu3 %v647_v0  ;;  %v718_v15 = vld [vmem:[#allocation11 + $0x4] sm:$0xf0] }
  0x3d   :  { %490 = vmatpush.bf16.msrb.mxu0 %v691_v37  ;;  %v631_v17 = vor.u32 %v718_v15, %v630_v14  ;;  %v505_v37 = vld [vmem:[#allocation5] sm:$0xff] }
  0x3f   :  { %367 = vmatpush.bf16.msra.mxu2 %v709_v29 }
  0x40   :  { %483 = vmatpush.bf16.msra.mxu3 %v639_v11 }
  0x41   :  { %491 = vmatpush.bf16.msrb.mxu0 %v683_v41 }
  0x44   :  { %484 = vmatpush.bf16.msra.mxu3 %v631_v17 }
  0x45   :  { %492 = vmatpush.bf16.msrb.mxu0 %v675_v47 }
  0x49   :  { %493 = vmatpush.bf16.msrb.mxu0 %v667_v53 }
  0x4d   :  { %494 = vmatpush.bf16.msrb.mxu0 %v659_v59 }
  0x51   :  { %495 = vmatpush.bf16.msrb.mxu0 %v651_v1 }
  0x55   :  { %496 = vmatpush.bf16.msrb.mxu0 %v643_v13 }
  0x59   :  { %497 = vmatpush.bf16.msrb.mxu0 %v635_v19 }
  0xb9   :  { %v204_v24 = vpop.f32.mrf.mxu0 }
  0xba   :  { %v205_v25 = vadd.f32 %v744_v23, %v204_v24 }
  0xbc   :  { %v208_v26 = vpack.c.bf16 %v205_v25, %v205_v25 }
  0xbe   :  { %285 = vmatmul.bf16.vlgmr.msra.gmra.mxu1 %v208_v26  ;;  %v391_v26 = vld [vmem:[%s1035_s9] sm:$0x3] }
  0xbf   :  { %v393_v32 = vperm.slane %v391_v26, 0 }
  0xc1   :  { %v206_v27 = vpop.f32.mrf.mxu0 }
  0xc2   :  { %v394_v27 = vperm.slane %v391_v26, 1 }
 0x13b   :  { %v286_v3 = vpop.f32.mrf.mxu1 }
 0x13c   :  { %v287_v4 = vadd.f32 %v745_v2, %v286_v3 }
 0x13e   :  { %v290_v5 = vmax.f32 %v287_v4, 0.0 }
 0x140   :  { %v291_v6 = vpack.c.bf16 %v290_v5, %v290_v5 }
 0x142   :  { %368 = vmatmul.bf16.vlgmr.msra.gmra.mxu2 %v291_v6 }
 0x143   :  { %v288_v7 = vpop.f32.mrf.mxu1 }
 0x1c5   :  { %v369_v21 = vpop.f32.mrf.mxu2 }
 0x1c6   :  { %v370_v22 = vadd.f32 %v746_v20, %v369_v21 }
 0x1c8   :  { %v373_v23 = vmax.f32 %v370_v22, 0.0 }
 0x1ca   :  { %v374_v24 = vpack.c.bf16 %v373_v23, %v373_v23 }
 0x1cc   :  { %485 = vmatmul.bf16.vlgmr.msra.gmra.mxu3 %v374_v24  ;;  %498 = vmatmul.bf16.vlgmr.msrb.gmra.mxu0 %v374_v24 }
 0x1cd   :  { %v371_v25 = vpop.f32.mrf.mxu2 }
 0x249   :  { %v499_v28 = vpop.f32.mrf.mxu0 }
 0x24a   :  { %v500_v29 = vadd.f32 %v499_v28, %v394_v27 }
 0x24c   :  { %v692_v30 = vclamps-f32 %v500_v29, 2.0 }
 0x24e   :  { %v507_v31 = vsub.f32 0.0, %v692_v30 }
 0x24f   :  { %v486_v33 = vpop.f32.mrf.mxu3 }
 0x250   :  { %v508_v34 = vmul.f32 1.442695, %v507_v31  ;;  %v487_v36 = vadd.f32 %v486_v33, %v393_v32 }
 0x251   :  { %v501_v35 = vpop.f32.mrf.mxu0 }
 0x252   :  { %747 = vpow2.f32 %v508_v34  ;;  %v506_v38 = vsub.f32 %v505_v37, %v487_v36 }
 0x257   :  { %v488_v39 = vpop.f32.mrf.mxu3 }
 0x258   :  { %v748_v40 = vpop.eup %747 }
 0x259   :  { %v510_v41 = vmul.f32 %v748_v40, %v506_v38 }
 0x25b   :  { %511 = vst [vmem:[#allocation13] sm:$0xff] %v510_v41 }
 0x25c   :  { %522 = dma.vmem_to_hbm [thread:$0]  %s518_s26, 128, %s520_s29, [#allocation4]  }
 0x25d   :  { %925 = dma.done.wait [#allocation4], 128  }
 0x25e   :  { %926 = vsyncadd [#allocation4], 4294967168 }
 0x25f   :  { %527 = vsyncpa [#allocation3], 1 }
 0x260   :  { %528 = vsyncpa [#allocation6], 1 }
 0x261   :  { %529 = vsyncpa [#allocation9], 1 }
 0x262   :  { %530 = vsyncpa [#allocation12], 1 }
 0x263   :  { %531 = vsyncpa [#allocation4], 1 }

</bundles_post_ra>
